<compile_context>
chip_gen: v5e
topology: v5e:2x2
jax: 0.10.0
libtpu: 0.0.40
codegen_flags: <defaults>
</compile_context>

<pallas_src>
import math

import jax
import jax.numpy as jnp
from jax.experimental import pallas as pl
from jax.experimental.pallas import tpu as pltpu

_OUT_W = 8     # narrow (but legal full-dim) output block width; column 0 holds the logit
_MIN_ROWS = 16  # bf16 sublane pack: 16 rows per packed vreg tile


def _round_up(n, m):
    return ((n + m - 1) // m) * m


def _r2c_kernel(x_ref, w1_ref, b1_ref, w2_ref, b2_ref, o_ref):
    # x_ref : [bb, in_dim] f32     w1_ref: [in_dim, h_p] bf16   b1_ref: [1, h_p] f32
    # w2_ref: [h_p, OUT_W] bf16    b2_ref: [1, OUT_W]   f32     o_ref : [bb, OUT_W] f32
    x = x_ref[...].astype(jnp.bfloat16)                      # in-kernel cast (hidden under DMA)
    h = jnp.dot(x, w1_ref[...], preferred_element_type=jnp.float32)   # MXU, f32 acc
    h = jnp.maximum(h + b1_ref[...], 0.0)                              # bias + ReLU, f32 VPU
    y = jnp.dot(h.astype(jnp.bfloat16), w2_ref[...],
                preferred_element_type=jnp.float32)                    # MXU, f32 acc
    o_ref[...] = (y + b2_ref[...]).astype(o_ref.dtype)


def prepare_params(params):
    """One-time pad + cast of the R2CHead parameters (call once, NOT per forward)."""
    w1, b1, w2, b2 = params["w1"], params["b1"], params["w2"], params["b2"]
    in_dim, hidden = w1.shape
    assert w2.shape == (hidden, 1) and b1.shape == (hidden,) and b2.shape == (1,)
    # Pad only the hidden (N of matmul1 / K of matmul2) dim; K of matmul1 stays the
    # caller's in_dim so x can be streamed unpadded.  256-wide pad when hidden is large
    # (full v6e/v7x MXU width), else 128.  Zero padding is mathematically inert.
    h_p = _round_up(hidden, 256 if hidden >= 256 else 128)
    w1_p = jnp.zeros((in_dim, h_p), jnp.bfloat16).at[:, :hidden].set(w1.astype(jnp.bfloat16))
    b1_p = jnp.zeros((1, h_p), jnp.float32).at[0, :hidden].set(b1.astype(jnp.float32))
    w2_p = jnp.zeros((h_p, _OUT_W), jnp.bfloat16).at[:hidden, :1].set(w2.astype(jnp.bfloat16))
    b2_p = jnp.zeros((1, _OUT_W), jnp.float32).at[0, :1].set(b2.astype(jnp.float32))
    return dict(w1=w1_p, b1=b1_p, w2=w2_p, b2=b2_p,
                in_dim=in_dim, hidden=hidden, h_p=h_p)


def _auto_block_b(batch_rows, in_dim, h_p, *, max_bb=4096,
                  stream_budget_bytes=24 * 1024 * 1024):
    # Per-row streaming/temporary VMEM (bytes): double-buffered f32 x tile, bf16 x copy,
    # f32 + bf16 h temporaries, double-buffered f32 out tile.
    per_row = 2 * 4 * in_dim + 2 * in_dim + 6 * h_p + 2 * 4 * _OUT_W
    bb = stream_budget_bytes // max(per_row, 1)
    bb = max(256, min(int(bb), max_bb))
    # Never exceed the batch (keeps the tile a well-formed, at-most-array-sized block).
    bb = min(bb, (batch_rows // _MIN_ROWS) * _MIN_ROWS)
    return max(_MIN_ROWS, _round_up(bb, _MIN_ROWS))


def r2c_head(x, prepared, *, block_b=None):
    """R2CHead forward (eval mode).  x: [B, in_dim] float32.  prepared: prepare_params(...)."""
    B, in_dim = x.shape
    assert in_dim == prepared["in_dim"]
    w1_p, b1_p, w2_p, b2_p = prepared["w1"], prepared["b1"], prepared["w2"], prepared["b2"]
    hidden, h_p = prepared["hidden"], prepared["h_p"]

    # Tiny batches: pad to one 16-row tile (negligible copy, keeps every block in-bounds).
    if B < _MIN_ROWS:
        x_in = jnp.zeros((_MIN_ROWS, in_dim), x.dtype).at[:B].set(x)
        B_eff = _MIN_ROWS
    else:
        x_in = x                      # zero-copy streaming for real batches
        B_eff = B

    bb = block_b if block_b is not None else _auto_block_b(B_eff, in_dim, h_p)
    n_steps = (B_eff + bb - 1) // bb
    B_p = n_steps * bb                # output is padded, so output blocks never overrun

    weight_bytes = sum(int(a.size) * a.dtype.itemsize for a in (w1_p, b1_p, w2_p, b2_p))
    # VMEM need: weights (x2 in case single-buffering is unavailable) + streaming tiles
    # + in-kernel temporaries + 4 MiB headroom for compiler scratch.
    needed = (2 * weight_bytes
              + 2 * bb * in_dim * 4                 # double-buffered f32 x tiles
              + bb * (2 * in_dim + 6 * h_p)         # bf16 x copy + f32/bf16 h temps
              + 2 * bb * _OUT_W * 4                 # double-buffered out tiles
              + (4 << 20))
    try:
        phys_vmem = int(pltpu.get_tpu_info().vmem_capacity_bytes)
    except Exception:
        phys_vmem = 64 << 20                        # v7x per-core size: safe lower bound
    vmem_limit = int(min(max(needed, 32 << 20), phys_vmem - (8 << 20)))

    cost = pl.CostEstimate(
        flops=2 * B * in_dim * hidden + 2 * B * hidden,
        transcendentals=0,
        bytes_accessed=B * in_dim * 4 + weight_bytes + B_p * _OUT_W * 4,
    )

    def build(single_buffer_weights):
        def const_spec(shape):
            # Constant index_map -> stays VMEM-resident across the grid (no re-DMA).
            if single_buffer_weights:
                return pl.BlockSpec(shape, lambda i: (0,) * len(shape),
                                    pipeline_mode=pl.Buffered(1))
            return pl.BlockSpec(shape, lambda i: (0,) * len(shape))

        return pl.pallas_call(
            _r2c_kernel,
            out_shape=jax.ShapeDtypeStruct((B_p, _OUT_W), jnp.float32),
            grid=(n_steps,),
            in_specs=[
                pl.BlockSpec((bb, in_dim), lambda i: (i, 0)),   # x streamed over batch
                const_spec(w1_p.shape), const_spec(b1_p.shape),
                const_spec(w2_p.shape), const_spec(b2_p.shape),
            ],
            out_specs=pl.BlockSpec((bb, _OUT_W), lambda i: (i, 0)),
            compiler_params=pltpu.CompilerParams(
                dimension_semantics=("parallel",),   # v7x dual-TC batch sharding
                vmem_limit_bytes=vmem_limit,
            ),
            cost_estimate=cost,
        )

    try:
        out = build(True)(x_in, w1_p, b1_p, w2_p, b2_p)
    except Exception:
        # Some builds reject buffer_count=1; default double-buffering is still correct.
        out = build(False)(x_in, w1_p, b1_p, w2_p, b2_p)

    return out[:B, :1]


def init_params(key, in_dim, hidden):
    """Deterministic synthetic init matching PyTorch Linear defaults."""
    k1, k2, k3, k4 = jax.random.split(key, 4)
    bound1 = 1.0 / math.sqrt(in_dim)
    w1 = jax.random.uniform(k1, (hidden, in_dim), jnp.float32, -bound1, bound1)
    b1 = jax.random.uniform(k2, (hidden,), jnp.float32, -bound1, bound1)
    bound2 = 1.0 / math.sqrt(hidden)
    w2 = jax.random.uniform(k3, (1, hidden), jnp.float32, -bound2, bound2)
    b2 = jax.random.uniform(k4, (1,), jnp.float32, -bound2, bound2)
    # transpose to [in, out] layout for the kernel
    return dict(w1=w1.T, b1=b1, w2=w2.T, b2=b2)


def reference(x, p):
    # Same bf16-operand / f32-accumulation numerics as the kernel.
    xb = x.astype(jnp.bfloat16)
    w1b = p["w1"].astype(jnp.bfloat16)
    w2b = p["w2"].astype(jnp.bfloat16)
    h = jnp.dot(xb, w1b, preferred_element_type=jnp.float32) + p["b1"][None, :]
    h = jnp.maximum(h, 0.0)
    y = jnp.dot(h.astype(jnp.bfloat16), w2b,
                preferred_element_type=jnp.float32) + p["b2"][None, :]
    return y


if __name__ == "__main__":
    # Small shapes consistent with the module; B=5 exercises the tiny-batch pad path.
    B, in_dim, hidden = 5, 32, 32     # `hidden` is R2CHead's `out_dim`

    key = jax.random.PRNGKey(0)
    kx, kp = jax.random.split(key)
    x = jax.random.normal(kx, (B, in_dim), jnp.float32)
    raw_params = init_params(kp, in_dim, hidden)
    prepared = prepare_params(raw_params)        # one-time pad/cast, not in the call path

    out = jax.block_until_ready(r2c_head(x, prepared))
    ref = reference(x, raw_params)

    assert out.shape == (B, 1)
    assert jnp.allclose(out, ref, atol=1e-2, rtol=1e-2), (out, ref)

    print("KERNEL_OK")
</pallas_src>

<mosaic_0001>
module attributes {stable_mosaic.version = 11 : i64} {
  func.func @_r2c_kernel(%arg0: i32, %arg1: memref<16x32xf32, #tpu.memory_space<vmem>>, %arg2: memref<32x128xbf16, #tpu.memory_space<vmem>>, %arg3: memref<1x128xf32, #tpu.memory_space<vmem>>, %arg4: memref<128x8xbf16, #tpu.memory_space<vmem>>, %arg5: memref<1x8xf32, #tpu.memory_space<vmem>>, %arg6: memref<16x8xf32, #tpu.memory_space<vmem>>) attributes {dimension_semantics = [#tpu.dimension_semantics<parallel>], iteration_bounds = array<i64: 1>, scalar_prefetch = 0 : i64, scratch_operands = 0 : i64, tpu.core_type = #tpu.core_type<tc>, window_params = [{transform_indices = @transform_0, window_bounds = array<i64: 16, 32>}, {pipeline_mode = #tpu.pipeline_mode<synchronous>, transform_indices = @transform_1, window_bounds = array<i64: 32, 128>}, {pipeline_mode = #tpu.pipeline_mode<synchronous>, transform_indices = @transform_2, window_bounds = array<i64: 1, 128>}, {pipeline_mode = #tpu.pipeline_mode<synchronous>, transform_indices = @transform_3, window_bounds = array<i64: 128, 8>}, {pipeline_mode = #tpu.pipeline_mode<synchronous>, transform_indices = @transform_4, window_bounds = array<i64: 1, 8>}, {transform_indices = @transform_5, window_bounds = array<i64: 16, 8>}]} {
    %c0 = arith.constant 0 : index
    %c0_0 = arith.constant 0 : index
    %0 = vector.load %arg1[%c0, %c0_0] : memref<16x32xf32, #tpu.memory_space<vmem>>, vector<16x32xf32>
    %1 = arith.truncf %0 : vector<16x32xf32> to vector<16x32xbf16>
    %c0_1 = arith.constant 0 : index
    %c0_2 = arith.constant 0 : index
    %2 = vector.load %arg2[%c0_1, %c0_2] : memref<32x128xbf16, #tpu.memory_space<vmem>>, vector<32x128xbf16>
    %cst = arith.constant dense<0.000000e+00> : vector<16x128xf32>
    %3 = tpu.matmul %1, %2, %cst {dimension_numbers = #tpu.dot_dimension_numbers<[1], [0], [0], [1], [0, 0, 1, 1], [], []>} : vector<16x32xbf16>, vector<32x128xbf16>, vector<16x128xf32> -> vector<16x128xf32>
    %c0_3 = arith.constant 0 : index
    %c0_4 = arith.constant 0 : index
    %4 = vector.load %arg3[%c0_3, %c0_4] : memref<1x128xf32, #tpu.memory_space<vmem>>, vector<1x128xf32>
    %5 = vector.broadcast %4 : vector<1x128xf32> to vector<16x128xf32>
    %6 = arith.addf %3, %5 : vector<16x128xf32>
    %cst_5 = arith.constant 0.000000e+00 : f32
    %7 = vector.broadcast %cst_5 : f32 to vector<16x128xf32>
    %8 = arith.maximumf %6, %7 : vector<16x128xf32>
    %9 = arith.truncf %8 : vector<16x128xf32> to vector<16x128xbf16>
    %c0_6 = arith.constant 0 : index
    %c0_7 = arith.constant 0 : index
    %10 = vector.load %arg4[%c0_6, %c0_7] : memref<128x8xbf16, #tpu.memory_space<vmem>>, vector<128x8xbf16>
    %cst_8 = arith.constant dense<0.000000e+00> : vector<16x8xf32>
    %11 = tpu.matmul %9, %10, %cst_8 {dimension_numbers = #tpu.dot_dimension_numbers<[1], [0], [0], [1], [0, 0, 1, 1], [], []>} : vector<16x128xbf16>, vector<128x8xbf16>, vector<16x8xf32> -> vector<16x8xf32>
    %c0_9 = arith.constant 0 : index
    %c0_10 = arith.constant 0 : index
    %12 = vector.load %arg5[%c0_9, %c0_10] : memref<1x8xf32, #tpu.memory_space<vmem>>, vector<1x8xf32>
    %13 = vector.broadcast %12 : vector<1x8xf32> to vector<16x8xf32>
    %14 = arith.addf %11, %13 : vector<16x8xf32>
    %c0_11 = arith.constant 0 : index
    %c0_12 = arith.constant 0 : index
    %15 = vector.load %arg6[%c0_11, %c0_12] : memref<16x8xf32, #tpu.memory_space<vmem>>, vector<16x8xf32>
    tpu.vector_store %arg6[%c0_11, %c0_12], %14 {strides = array<i32>} : memref<16x8xf32, #tpu.memory_space<vmem>>, vector<16x8xf32>,
    return
  }
  func.func @transform_0(%arg0: i32) -> (i32, i32) {
    %c0_i32 = arith.constant 0 : i32
    %c0_i32_0 = arith.constant 0 : i32
    return %arg0, %c0_i32 : i32, i32
  }
  func.func @transform_1(%arg0: i32) -> (i32, i32) {
    %c0_i32 = arith.constant 0 : i32
    %c0_i32_0 = arith.constant 0 : i32
    %c0_i32_1 = arith.constant 0 : i32
    return %c0_i32, %c0_i32_0 : i32, i32
  }
  func.func @transform_2(%arg0: i32) -> (i32, i32) {
    %c0_i32 = arith.constant 0 : i32
    %c0_i32_0 = arith.constant 0 : i32
    %c0_i32_1 = arith.constant 0 : i32
    return %c0_i32, %c0_i32_0 : i32, i32
  }
  func.func @transform_3(%arg0: i32) -> (i32, i32) {
    %c0_i32 = arith.constant 0 : i32
    %c0_i32_0 = arith.constant 0 : i32
    %c0_i32_1 = arith.constant 0 : i32
    return %c0_i32, %c0_i32_0 : i32, i32
  }
  func.func @transform_4(%arg0: i32) -> (i32, i32) {
    %c0_i32 = arith.constant 0 : i32
    %c0_i32_0 = arith.constant 0 : i32
    %c0_i32_1 = arith.constant 0 : i32
    return %c0_i32, %c0_i32_0 : i32, i32
  }
  func.func @transform_5(%arg0: i32) -> (i32, i32) {
    %c0_i32 = arith.constant 0 : i32
    %c0_i32_0 = arith.constant 0 : i32
    return %arg0, %c0_i32 : i32, i32
  }
}

module attributes {stable_mosaic.version = 11 : i64} {
  func.func @_r2c_kernel(%arg0: i32, %arg1: memref<16x32xf32, #tpu.memory_space<vmem>>, %arg2: memref<32x128xbf16, #tpu.memory_space<vmem>>, %arg3: memref<1x128xf32, #tpu.memory_space<vmem>>, %arg4: memref<128x8xbf16, #tpu.memory_space<vmem>>, %arg5: memref<1x8xf32, #tpu.memory_space<vmem>>, %arg6: memref<16x8xf32, #tpu.memory_space<vmem>>) attributes {dimension_semantics = [#tpu.dimension_semantics<parallel>], iteration_bounds = array<i64: 1>, scalar_prefetch = 0 : i64, scratch_operands = 0 : i64, tpu.core_type = #tpu.core_type<tc>, window_params = [{transform_indices = @transform_0, window_bounds = array<i64: 16, 32>}, {pipeline_mode = #tpu.pipeline_mode<synchronous>, transform_indices = @transform_1, window_bounds = array<i64: 32, 128>}, {pipeline_mode = #tpu.pipeline_mode<synchronous>, transform_indices = @transform_2, window_bounds = array<i64: 1, 128>}, {pipeline_mode = #tpu.pipeline_mode<synchronous>, transform_indices = @transform_3, window_bounds = array<i64: 128, 8>}, {pipeline_mode = #tpu.pipeline_mode<synchronous>, transform_indices = @transform_4, window_bounds = array<i64: 1, 8>}, {transform_indices = @transform_5, window_bounds = array<i64: 16, 8>}]} {
    %c0 = arith.constant 0 : index
    %c0_0 = arith.constant 0 : index
    %0 = vector.load %arg1[%c0, %c0_0] : memref<16x32xf32, #tpu.memory_space<vmem>>, vector<16x32xf32>
    %1 = arith.truncf %0 : vector<16x32xf32> to vector<16x32xbf16>
    %c0_1 = arith.constant 0 : index
    %c0_2 = arith.constant 0 : index
    %2 = vector.load %arg2[%c0_1, %c0_2] : memref<32x128xbf16, #tpu.memory_space<vmem>>, vector<32x128xbf16>
    %cst = arith.constant dense<0.000000e+00> : vector<16x128xf32>
    %3 = tpu.matmul %1, %2, %cst {dimension_numbers = #tpu.dot_dimension_numbers<[1], [0], [0], [1], [0, 0, 1, 1], [], []>} : vector<16x32xbf16>, vector<32x128xbf16>, vector<16x128xf32> -> vector<16x128xf32>
    %c0_3 = arith.constant 0 : index
    %c0_4 = arith.constant 0 : index
    %4 = vector.load %arg3[%c0_3, %c0_4] : memref<1x128xf32, #tpu.memory_space<vmem>>, vector<1x128xf32>
    %5 = vector.broadcast %4 : vector<1x128xf32> to vector<16x128xf32>
    %6 = arith.addf %3, %5 : vector<16x128xf32>
    %cst_5 = arith.constant 0.000000e+00 : f32
    %7 = vector.broadcast %cst_5 : f32 to vector<16x128xf32>
    %8 = arith.maximumf %6, %7 : vector<16x128xf32>
    %9 = arith.truncf %8 : vector<16x128xf32> to vector<16x128xbf16>
    %c0_6 = arith.constant 0 : index
    %c0_7 = arith.constant 0 : index
    %10 = vector.load %arg4[%c0_6, %c0_7] : memref<128x8xbf16, #tpu.memory_space<vmem>>, vector<128x8xbf16>
    %cst_8 = arith.constant dense<0.000000e+00> : vector<16x8xf32>
    %11 = tpu.matmul %9, %10, %cst_8 {dimension_numbers = #tpu.dot_dimension_numbers<[1], [0], [0], [1], [0, 0, 1, 1], [], []>} : vector<16x128xbf16>, vector<128x8xbf16>, vector<16x8xf32> -> vector<16x8xf32>
    %c0_9 = arith.constant 0 : index
    %c0_10 = arith.constant 0 : index
    %12 = vector.load %arg5[%c0_9, %c0_10] : memref<1x8xf32, #tpu.memory_space<vmem>>, vector<1x8xf32>
    %13 = vector.broadcast %12 : vector<1x8xf32> to vector<16x8xf32>
    %14 = arith.addf %11, %13 : vector<16x8xf32>
    %c0_11 = arith.constant 0 : index
    %c0_12 = arith.constant 0 : index
    %15 = vector.load %arg6[%c0_11, %c0_12] : memref<16x8xf32, #tpu.memory_space<vmem>>, vector<16x8xf32>
    tpu.vector_store %arg6[%c0_11, %c0_12], %14 {strides = array<i32>} : memref<16x8xf32, #tpu.memory_space<vmem>>, vector<16x8xf32>,
    return
  }
  func.func @transform_0(%arg0: i32) -> (i32, i32) {
    %c0_i32 = arith.constant 0 : i32
    %c0_i32_0 = arith.constant 0 : i32
    return %arg0, %c0_i32 : i32, i32
  }
  func.func @transform_1(%arg0: i32) -> (i32, i32) {
    %c0_i32 = arith.constant 0 : i32
    %c0_i32_0 = arith.constant 0 : i32
    %c0_i32_1 = arith.constant 0 : i32
    return %c0_i32, %c0_i32_0 : i32, i32
  }
  func.func @transform_2(%arg0: i32) -> (i32, i32) {
    %c0_i32 = arith.constant 0 : i32
    %c0_i32_0 = arith.constant 0 : i32
    %c0_i32_1 = arith.constant 0 : i32
    return %c0_i32, %c0_i32_0 : i32, i32
  }
  func.func @transform_3(%arg0: i32) -> (i32, i32) {
    %c0_i32 = arith.constant 0 : i32
    %c0_i32_0 = arith.constant 0 : i32
    %c0_i32_1 = arith.constant 0 : i32
    return %c0_i32, %c0_i32_0 : i32, i32
  }
  func.func @transform_4(%arg0: i32) -> (i32, i32) {
    %c0_i32 = arith.constant 0 : i32
    %c0_i32_0 = arith.constant 0 : i32
    %c0_i32_1 = arith.constant 0 : i32
    return %c0_i32, %c0_i32_0 : i32, i32
  }
  func.func @transform_5(%arg0: i32) -> (i32, i32) {
    %c0_i32 = arith.constant 0 : i32
    %c0_i32_0 = arith.constant 0 : i32
    return %arg0, %c0_i32 : i32, i32
  }
}

</mosaic_0001>

<bundles_post_ra>
// kernel: tpu_custom_call.1
= control target key start
LH: loop header
LB: loop body
LE: loop exit
PB: predicated region body
PF: predicated region fallthrough
CT: control target
= control target key end

     0   :  { %vm44_vm0 = vcmask 261120   ;;  %vm147_vm1 = vcmask 64512   ;;  %s285_s1 = inlined_call_operand.vmem [shape: bf16[32,128], index: 1, kind: input, shape index: {}]   ;;  %s286_s0 = inlined_call_operand.vmem [shape: f32[16,32], index: 0, kind: input, shape index: {}]   ;;  %s287_s3 = inlined_call_operand.vmem [shape: bf16[128,8], index: 3, kind: input, shape index: {}]   ;;  %s288_s2 = inlined_call_operand.vmem [shape: f32[1,128], index: 2, kind: input, shape index: {}]   ;;  %s289_s4 = inlined_call_operand.vmem [shape: f32[1,8], index: 4, kind: input, shape index: {}]   ;;  %s290_s5 = inlined_call_operand.vmem [shape: f32[16,8], index: 5, kind: output, shape index: {}]  }
   0x1   :  { %v196_v0 = vld [vmem:[%s285_s1 + $0x8] sm:$0xff]  ;;  %v195_v1 = vld [vmem:[%s285_s1] sm:$0xff]  ;;  %v204_v2 = vld [vmem:[%s287_s3 + $0x38] sm:$0xff] }
   0x2   :  { %54 = vmatpush.bf16.msra.mxu0 %v196_v0  ;;  %v21_v3 = vld [vmem:[%s286_s0] sm:$0xff]  ;;  %v22_v4 = vld [vmem:[%s286_s0 + $0x8] sm:$0xff]  ;;  %133 = vmatpush.bf16.msra.mxu1 %v204_v2  ;;  %v203_v5 = vld [vmem:[%s287_s3 + $0x30] sm:$0xff] }
   0x3   :  { %v23_v6 = vpack.c.bf16 %v22_v4, %v21_v3  ;;  %v202_v7 = vld [vmem:[%s287_s3 + $0x28] sm:$0xff]  ;;  %v201_v8 = vld [vmem:[%s287_s3 + $0x20] sm:$0xff]  ;;  %v200_v9 = vld [vmem:[%s287_s3 + $0x18] sm:$0xff] }
   0x4   :  { %v199_v10 = vld [vmem:[%s287_s3 + $0x10] sm:$0xff]  ;;  %v198_v11 = vld [vmem:[%s287_s3 + $0x8] sm:$0xff]  ;;  %v197_v12 = vld [vmem:[%s287_s3] sm:$0xff] }
   0x5   :  { %v205_v14 = vld [vmem:[%s288_s2] ss:$0 sm:$0xff] }
   0x6   :  { %55 = vmatpush.bf16.msra.mxu0 %v195_v1  ;;  %134 = vmatpush.bf16.msra.mxu1 %v203_v5  ;;  %v206_v21 = vld [vmem:[%s289_s4] ss:$0 sm:$0xff] }
   0x9   :  { %162 = vmatmul.msk.bf16.vlgmr.msra.gmra.mxu0 %vm44_vm0, %v23_v6 }
   0xa   :  { %135 = vmatpush.bf16.msra.mxu1 %v202_v7 }
   0xe   :  { %136 = vmatpush.bf16.msra.mxu1 %v201_v8 }
  0x12   :  { %137 = vmatpush.bf16.msra.mxu1 %v200_v9 }
  0x16   :  { %138 = vmatpush.bf16.msra.mxu1 %v199_v10 }
  0x1a   :  { %139 = vmatpush.bf16.msra.mxu1 %v198_v11 }
  0x1e   :  { %140 = vmatpush.bf16.msra.mxu1 %v197_v12 }
  0x86   :  { %v57_v13 = vpop.f32.mrf.mxu0 }
  0x87   :  { %v58_v15 = vadd.f32 %v205_v14, %v57_v13 }
  0x89   :  { %v62_v18 = vmax.f32 %v58_v15, 0.0 }
  0x8e   :  { %v59_v16 = vpop.f32.mrf.mxu0 }
  0x8f   :  { %v60_v17 = vadd.f32 %v205_v14, %v59_v16 }
  0x91   :  { %v63_v19 = vmax.f32 %v60_v17, 0.0 }
  0x93   :  { %v64_v20 = vpack.c.bf16 %v63_v19, %v62_v18 }
  0x95   :  { %141 = vmatmul.bf16.vlgmr.msra.gmra.mxu1 %v64_v20 }
 0x112   :  { %v142_v22 = vpop.f32.mrf.mxu1 }
 0x113   :  { %v143_v23 = vadd.f32 %v206_v21, %v142_v22 }
 0x115   :  { %148 = vst.msk [vmem:[%s290_s5] sm:$0xff] %vm147_vm1, %v143_v23 }
 0x11a   :  { %v144_v24 = vpop.f32.mrf.mxu1 }
 0x11b   :  { %v145_v25 = vadd.f32 %v206_v21, %v144_v24 }
 0x11d   :  { %149 = vst.msk [vmem:[%s290_s5 + $0x8] sm:$0xff] %vm147_vm1, %v145_v25 }

// kernel: tpu_custom_call.1
= control target key start
LH: loop header
LB: loop body
LE: loop exit
PB: predicated region body
PF: predicated region fallthrough
CT: control target
= control target key end

     0   :  { %vm44_vm0 = vcmask 261120   ;;  %vm147_vm1 = vcmask 64512   ;;  %s285_s1 = inlined_call_operand.vmem [shape: bf16[32,128], index: 1, kind: input, shape index: {}]   ;;  %s286_s0 = inlined_call_operand.vmem [shape: f32[16,32], index: 0, kind: input, shape index: {}]   ;;  %s287_s3 = inlined_call_operand.vmem [shape: bf16[128,8], index: 3, kind: input, shape index: {}]   ;;  %s288_s2 = inlined_call_operand.vmem [shape: f32[1,128], index: 2, kind: input, shape index: {}]   ;;  %s289_s4 = inlined_call_operand.vmem [shape: f32[1,8], index: 4, kind: input, shape index: {}]   ;;  %s290_s5 = inlined_call_operand.vmem [shape: f32[16,8], index: 5, kind: output, shape index: {}]  }
   0x1   :  { %v196_v0 = vld [vmem:[%s285_s1 + $0x8] sm:$0xff]  ;;  %v195_v1 = vld [vmem:[%s285_s1] sm:$0xff]  ;;  %v204_v2 = vld [vmem:[%s287_s3 + $0x38] sm:$0xff] }
   0x2   :  { %54 = vmatpush.bf16.msra.mxu0 %v196_v0  ;;  %v21_v3 = vld [vmem:[%s286_s0] sm:$0xff]  ;;  %v22_v4 = vld [vmem:[%s286_s0 + $0x8] sm:$0xff]  ;;  %133 = vmatpush.bf16.msra.mxu1 %v204_v2  ;;  %v203_v5 = vld [vmem:[%s287_s3 + $0x30] sm:$0xff] }
   0x3   :  { %v23_v6 = vpack.c.bf16 %v22_v4, %v21_v3  ;;  %v202_v7 = vld [vmem:[%s287_s3 + $0x28] sm:$0xff]  ;;  %v201_v8 = vld [vmem:[%s287_s3 + $0x20] sm:$0xff]  ;;  %v200_v9 = vld [vmem:[%s287_s3 + $0x18] sm:$0xff] }
   0x4   :  { %v199_v10 = vld [vmem:[%s287_s3 + $0x10] sm:$0xff]  ;;  %v198_v11 = vld [vmem:[%s287_s3 + $0x8] sm:$0xff]  ;;  %v197_v12 = vld [vmem:[%s287_s3] sm:$0xff] }
   0x5   :  { %v205_v14 = vld [vmem:[%s288_s2] ss:$0 sm:$0xff] }
   0x6   :  { %55 = vmatpush.bf16.msra.mxu0 %v195_v1  ;;  %134 = vmatpush.bf16.msra.mxu1 %v203_v5  ;;  %v206_v21 = vld [vmem:[%s289_s4] ss:$0 sm:$0xff] }
   0x9   :  { %162 = vmatmul.msk.bf16.vlgmr.msra.gmra.mxu0 %vm44_vm0, %v23_v6 }
   0xa   :  { %135 = vmatpush.bf16.msra.mxu1 %v202_v7 }
   0xe   :  { %136 = vmatpush.bf16.msra.mxu1 %v201_v8 }
  0x12   :  { %137 = vmatpush.bf16.msra.mxu1 %v200_v9 }
  0x16   :  { %138 = vmatpush.bf16.msra.mxu1 %v199_v10 }
  0x1a   :  { %139 = vmatpush.bf16.msra.mxu1 %v198_v11 }
  0x1e   :  { %140 = vmatpush.bf16.msra.mxu1 %v197_v12 }
  0x86   :  { %v57_v13 = vpop.f32.mrf.mxu0 }
  0x87   :  { %v58_v15 = vadd.f32 %v205_v14, %v57_v13 }
  0x89   :  { %v62_v18 = vmax.f32 %v58_v15, 0.0 }
  0x8e   :  { %v59_v16 = vpop.f32.mrf.mxu0 }
  0x8f   :  { %v60_v17 = vadd.f32 %v205_v14, %v59_v16 }
  0x91   :  { %v63_v19 = vmax.f32 %v60_v17, 0.0 }
  0x93   :  { %v64_v20 = vpack.c.bf16 %v63_v19, %v62_v18 }
  0x95   :  { %141 = vmatmul.bf16.vlgmr.msra.gmra.mxu1 %v64_v20 }
 0x112   :  { %v142_v22 = vpop.f32.mrf.mxu1 }
 0x113   :  { %v143_v23 = vadd.f32 %v206_v21, %v142_v22 }
 0x115   :  { %148 = vst.msk [vmem:[%s290_s5] sm:$0xff] %vm147_vm1, %v143_v23 }
 0x11a   :  { %v144_v24 = vpop.f32.mrf.mxu1 }
 0x11b   :  { %v145_v25 = vadd.f32 %v206_v21, %v144_v24 }
 0x11d   :  { %149 = vst.msk [vmem:[%s290_s5 + $0x8] sm:$0xff] %vm147_vm1, %v145_v25 }

</bundles_post_ra>
